<compile_context>
chip_gen: v7x
topology: tpu7x:2x2x1
jax: 0.10.0
libtpu: 0.0.40
codegen_flags: <defaults>
</compile_context>

<pallas_src>
import functools

import jax
import jax.numpy as jnp
from jax.experimental import pallas as pl
from jax.experimental.pallas import tpu as pltpu

BN_EPS = 1e-5
NORM_EPS = 1e-12


# --------------------------------------------------------------------------- #
# Kernel 1: 1x1 conv + per-batch token statistics + prototype distances.
# --------------------------------------------------------------------------- #
def oga_bsum_kernel(x_ref, wf_ref, po_ref, om_ref, bsum_ref,
                    s1_ref, s2_ref, *, inv_hw):
    # Grid: (batch tile b, token tile t).  Per-step ref shapes:
    #   x_ref:  (tb, tm, cin)    wf_ref: (cin, E)     po_ref: (K, E)
    #   om_ref: (tb, K, 1)       bsum_ref: (tb, 1, E)
    #   s1/s2 scratch: (tb, E) f32, persistent across the token axis.
    t = pl.program_id(1)

    @pl.when(t == 0)
    def _init():
        s1_ref[...] = jnp.zeros_like(s1_ref)
        s2_ref[...] = jnp.zeros_like(s2_ref)

    tb, tm, cin = x_ref.shape
    E = wf_ref.shape[1]

    # 1x1 conv over channels: flatten tb batch rows into one (tb*tm, cin) MXU
    # matmul; cast x in-kernel (VPU slot, free) instead of materializing a
    # bf16 copy of x in HBM.
    xt = x_ref[...].reshape(tb * tm, cin).astype(wf_ref.dtype)
    barz = jnp.dot(xt, wf_ref[...],
                   preferred_element_type=jnp.float32)           # (tb*tm, E) f32
    bz = barz.reshape(tb, tm, E)

    # Exact f32 per-batch token statistics (zero-padded rows contribute 0).
    s1_ref[...] += jnp.sum(bz, axis=1)                            # sum_s barz
    s2_ref[...] += jnp.sum(bz * bz, axis=1)                       # sum_s barz^2

    @pl.when(t == pl.num_programs(1) - 1)
    def _finalize():
        m1 = s1_ref[...] * inv_hw                                 # (tb, E)
        m2 = s2_ref[...] * inv_hw                                 # (tb, E)
        # mean_s (barz - po_k)^2 = var + (m1 - po_k)^2   (cancellation-safe).
        var = jnp.maximum(m2 - m1 * m1, 0.0)                      # (tb, E)
        po = po_ref[...].astype(jnp.float32)                      # (K, E)
        diff = m1[:, None, :] - po[None, :, :]                    # (tb, K, E)
        B = jnp.sqrt(var[:, None, :] + diff * diff)               # (tb, K, E)
        om = om_ref[...].astype(jnp.float32)                      # (tb, K, 1)
        bsum = jnp.sum(om * B, axis=1)                            # (tb, E)
        bsum_ref[...] = bsum[:, None, :].astype(bsum_ref.dtype)   # (tb, 1, E)


# --------------------------------------------------------------------------- #
# Kernel 2: MLP head (eval-BN folded into w1/b1) + L2 normalize, all bs rows.
# --------------------------------------------------------------------------- #
def mlp_head_kernel(xagv_ref, bsum_ref, w1a_ref, w1b_ref, b1_ref,
                    w2_ref, b2_ref, out_ref):
    # concat([x_agv, Bsum]) @ w1 == x_agv @ w1a + Bsum @ w1b  (no lane concat).
    h = (jnp.dot(xagv_ref[...], w1a_ref[...], preferred_element_type=jnp.float32)
         + jnp.dot(bsum_ref[...], w1b_ref[...], preferred_element_type=jnp.float32)
         + b1_ref[...])
    h = jnp.maximum(h, 0.0)        # ReLU; Dropout(p=0.2) is identity in eval.
    o = (jnp.dot(h, w2_ref[...], preferred_element_type=jnp.float32)
         + b2_ref[...])
    # F.normalize(dim=-1): o / max(||o||, 1e-12), via EUP rsqrt.
    ssq = jnp.sum(o * o, axis=1, keepdims=True)
    out_ref[...] = (o * jax.lax.rsqrt(
        jnp.maximum(ssq, NORM_EPS * NORM_EPS))).astype(out_ref.dtype)


# --------------------------------------------------------------------------- #
# Host-side helpers / wrapper.
# --------------------------------------------------------------------------- #
def _round_up(a, m):
    return ((a + m - 1) // m) * m


def _pick_batch_tile(bs, max_tb):
    """Largest divisor of bs <= max_tb that keeps >= 2 grid steps on the
    parallel batch axis (so megacore / 2-TC chips can still split work)."""
    best = 1
    for tb in range(1, min(bs, max_tb) + 1):
        if bs % tb == 0 and (bs // tb >= 2 or bs == 1):
            best = tb
    return best


def _vmem_limit_bytes(tb, tm, cin, E, K, x_bytes, wf_bytes):
    # Mosaic double-buffers every pipelined input block (resident weights too).
    blocks = (2 * tb * tm * cin * x_bytes        # x tile
              + 2 * cin * E * wf_bytes           # conv weight
              + 2 * K * E * 4                    # prototypes
              + 2 * tb * K * 4                   # omega rows
              + 2 * tb * E * 4)                  # bsum output block
    scratch = 2 * tb * E * 4                     # s1, s2
    temps = 3 * tb * tm * E * 4                  # barz + squared temporaries
    est = int(1.25 * (blocks + scratch + temps))
    # Cap at ~48 MiB (~75% of v7x's 64 MiB physical VMEM; safe on v5e/v6e).
    return min(48 * 1024 * 1024, max(16 * 1024 * 1024, est))


def prepare_params(params, emb, *, matmul_dtype=jnp.float32):
    """One-time (load-time) parameter prep.  Not meant to run per forward:
    - cast the conv weight to the matmul dtype once,
    - fold eval-mode BatchNorm into the first Linear:
        scale = g / sqrt(rv + eps);  w1' = w1 * scale;  b1' = (b1 - rm)*scale + bt,
    - split w1' so no lane-axis concat is needed (x_agv occupies the first E
      rows, Bsum the last E rows, matching torch.cat((x_agv, B), -1)).
    The tiny MLP head stays f32 for accuracy regardless of matmul_dtype."""
    scale = params["g"] * jax.lax.rsqrt(params["rv"] + BN_EPS)        # (1, 4E)
    w1f = params["w1"].astype(jnp.float32) * scale                    # (2E, 4E)
    b1f = (params["b1"] - params["rm"]) * scale + params["bt"]        # (1, 4E)
    return {
        "wf": params["wf"].astype(matmul_dtype),   # (cin, E)
        "w1a": w1f[:emb, :],                       # multiplies x_agv
        "w1b": w1f[emb:, :],                       # multiplies Bsum
        "b1": b1f,
        "w2": params["w2"].astype(jnp.float32),
        "b2": params["b2"].astype(jnp.float32),
    }


def oga_forward(x, p_o, omega, x_agv, prepared, *,
                max_tile_tokens=512, max_batch_rows=8):
    bs, hw, cin = x.shape
    K, E = p_o.shape

    # Token tiling (zero-pad hw: conv has no bias, so padded rows add 0 to the
    # sums while the mean still divides by the true hw).
    if hw <= max_tile_tokens:
        tm = _round_up(hw, 8)
        hw_p = tm
    else:
        tm = max(8, (max_tile_tokens // 8) * 8)
        hw_p = _round_up(hw, tm)
    n_t = hw_p // tm
    if hw_p != hw:
        x = jnp.pad(x, ((0, 0), (0, hw_p - hw), (0, 0)))

    # Batch tiling: tb rows per step -> conv matmul M = tb*tm (MXU-friendly).
    tb = _pick_batch_tile(bs, max_batch_rows)
    n_b = bs // tb

    om3 = omega.reshape(bs, K, 1).astype(jnp.float32)
    wf = prepared["wf"]

    kernel = functools.partial(oga_bsum_kernel, inv_hw=1.0 / hw)

    grid_spec = pltpu.PrefetchScalarGridSpec(
        num_scalar_prefetch=0,
        grid=(n_b, n_t),                                    # token (reduction) axis last
        in_specs=[
            pl.BlockSpec((tb, tm, cin), lambda b, t: (b, t, 0)),   # x tile (native dtype)
            pl.BlockSpec((cin, E), lambda b, t: (0, 0)),           # conv weight (resident)
            pl.BlockSpec((K, E), lambda b, t: (0, 0)),             # prototypes (resident)
            pl.BlockSpec((tb, K, 1), lambda b, t: (b, 0, 0)),      # omega rows
        ],
        out_specs=pl.BlockSpec((tb, 1, E), lambda b, t: (b, 0, 0)),
        scratch_shapes=[pltpu.VMEM((tb, E), jnp.float32),          # sum barz
                        pltpu.VMEM((tb, E), jnp.float32)],         # sum barz^2
    )

    bsum = pl.pallas_call(
        kernel,
        out_shape=jax.ShapeDtypeStruct((bs, 1, E), jnp.float32),
        grid_spec=grid_spec,
        compiler_params=pltpu.CompilerParams(
            dimension_semantics=("parallel", "arbitrary"),
            vmem_limit_bytes=_vmem_limit_bytes(
                tb, tm, cin, E, K, x.dtype.itemsize, wf.dtype.itemsize)),
    )(x, wf, p_o, om3).reshape(bs, E)

    # MLP + normalize epilogue, batched over all bs rows in a single call
    # (one well-shaped matmul instead of bs M=1 matmuls; also keeps the big
    # kernel's VMEM free of MLP weights).
    out = pl.pallas_call(
        mlp_head_kernel,
        out_shape=jax.ShapeDtypeStruct((bs, E), jnp.float32),
    )(x_agv.astype(jnp.float32), bsum,
      prepared["w1a"], prepared["w1b"], prepared["b1"],
      prepared["w2"], prepared["b2"])
    return out


# --------------------------------------------------------------------------- #
# Pure-JAX reference and parameter init.
# --------------------------------------------------------------------------- #
def oga_reference(x, p_o, omega, x_agv, params):
    """Pure-JAX mirror of the PyTorch forward (eval mode), f32."""
    barz = jnp.einsum("bsc,ce->bse", x, params["wf"])                 # (bs, hw, E)
    diff = barz[None] - p_o[:, None, None, :]                         # (K, bs, hw, E)
    B = jnp.sqrt(jnp.mean(diff ** 2, axis=2))                         # (K, bs, E)
    Bsum = jnp.sum(omega.T[:, :, None] * B, axis=0)                   # (bs, E)
    z = jnp.concatenate([x_agv, Bsum], axis=-1)
    h = z @ params["w1"] + params["b1"][0]
    h = (h - params["rm"][0]) / jnp.sqrt(params["rv"][0] + BN_EPS) \
        * params["g"][0] + params["bt"][0]
    h = jnp.maximum(h, 0.0)
    o = h @ params["w2"] + params["b2"][0]
    return o / jnp.maximum(jnp.linalg.norm(o, axis=-1, keepdims=True), NORM_EPS)


def init_params(key, cin, emb):
    ks = jax.random.split(key, 8)
    f32 = jnp.float32
    return {
        # Conv2d(cin, emb, 1, bias=False) weight (emb, cin, 1, 1) -> stored (cin, emb)
        "wf": jax.random.normal(ks[0], (cin, emb), f32) * 0.05,
        # Linear(2E -> 4E): weight (4E, 2E) -> stored transposed (2E, 4E)
        "w1": jax.random.normal(ks[1], (2 * emb, 4 * emb), f32) * 0.05,
        "b1": jax.random.normal(ks[2], (1, 4 * emb), f32) * 0.01,
        # BatchNorm1d(4E), eval-mode stats
        "g":  1.0 + 0.1 * jax.random.normal(ks[3], (1, 4 * emb), f32),
        "bt": 0.05 * jax.random.normal(ks[4], (1, 4 * emb), f32),
        "rm": 0.05 * jax.random.normal(ks[5], (1, 4 * emb), f32),
        "rv": 1.0 + 0.3 * jax.random.uniform(ks[6], (1, 4 * emb), f32),
        # Linear(4E -> E)
        "w2": jax.random.normal(ks[7], (4 * emb, emb), f32) * 0.05,
        "b2": jnp.zeros((1, emb), f32),
    }


if __name__ == "__main__":
    # Small shapes consistent with the module (production: cin=768, hw=14*14).
    bs, H, W, cin, emb, K = 2, 8, 8, 16, 32, 4
    hw = H * W

    key = jax.random.PRNGKey(0)
    kx, kp, ko, ka, kparams, k2 = jax.random.split(key, 6)

    x = jax.random.normal(kx, (bs, hw, cin), jnp.float32)       # (bs, hw, ch)
    p_o = jax.random.normal(kp, (K, emb), jnp.float32)          # prototypes
    omega = jax.random.uniform(ko, (bs, K), jnp.float32)        # mixing weights
    x_agv = jax.random.normal(ka, (bs, emb), jnp.float32)       # aggregated feature

    params = init_params(kparams, cin, emb)
    ref = oga_reference(x, p_o, omega, x_agv, params)

    # f32 run with a small token tile -> grid (2, 4): exercises the multi-tile
    # statistics accumulation and the finalize path.
    prepared_f32 = prepare_params(params, emb, matmul_dtype=jnp.float32)
    out = jax.block_until_ready(
        oga_forward(x, p_o, omega, x_agv, prepared_f32, max_tile_tokens=16))
    assert out.shape == (bs, emb)
    assert jnp.allclose(out, ref, rtol=1e-3, atol=1e-4), (
        f"f32 max abs err {jnp.max(jnp.abs(out - ref))}")

    # bf16 conv-matmul run (production config); statistics and head stay f32.
    prepared_bf16 = prepare_params(params, emb, matmul_dtype=jnp.bfloat16)
    out_bf16 = jax.block_until_ready(
        oga_forward(x, p_o, omega, x_agv, prepared_bf16, max_tile_tokens=16))
    assert jnp.allclose(out_bf16, ref, rtol=5e-2, atol=5e-2), (
        f"bf16 max abs err {jnp.max(jnp.abs(out_bf16 - ref))}")

    # Batched-rows (tb=2) + padded-token (52 -> 64) path.
    bs2, hw2 = 4, 52
    kx2, ko2, ka2 = jax.random.split(k2, 3)
    x2 = jax.random.normal(kx2, (bs2, hw2, cin), jnp.float32)
    omega2 = jax.random.uniform(ko2, (bs2, K), jnp.float32)
    x_agv2 = jax.random.normal(ka2, (bs2, emb), jnp.float32)
    ref2 = oga_reference(x2, p_o, omega2, x_agv2, params)
    out2 = jax.block_until_ready(
        oga_forward(x2, p_o, omega2, x_agv2, prepared_f32,
                    max_tile_tokens=16, max_batch_rows=4))
    assert jnp.allclose(out2, ref2, rtol=1e-3, atol=1e-4), (
        f"tb/pad max abs err {jnp.max(jnp.abs(out2 - ref2))}")

    print("KERNEL_OK")
</pallas_src>

<mosaic_0001>
module attributes {stable_mosaic.version = 11 : i64} {
  func.func @oga_bsum_kernel(%arg0: i32, %arg1: i32, %arg2: memref<1x16x16xf32, #tpu.memory_space<vmem>>, %arg3: memref<16x32xf32, #tpu.memory_space<vmem>>, %arg4: memref<4x32xf32, #tpu.memory_space<vmem>>, %arg5: memref<1x4x1xf32, #tpu.memory_space<vmem>>, %arg6: memref<1x1x32xf32, #tpu.memory_space<vmem>>, %arg7: memref<1x32xf32, #tpu.memory_space<vmem>>, %arg8: memref<1x32xf32, #tpu.memory_space<vmem>>) attributes {dimension_semantics = [#tpu.dimension_semantics<parallel>, #tpu.dimension_semantics<arbitrary>], iteration_bounds = array<i64: 2, 4>, scalar_prefetch = 0 : i64, scratch_operands = 2 : i64, tpu.core_type = #tpu.core_type<tc>, window_params = [{transform_indices = @transform_0, window_bounds = array<i64: 1, 16, 16>}, {pipeline_mode = #tpu.pipeline_mode<synchronous>, transform_indices = @transform_1, window_bounds = array<i64: 16, 32>}, {pipeline_mode = #tpu.pipeline_mode<synchronous>, transform_indices = @transform_2, window_bounds = array<i64: 4, 32>}, {transform_indices = @transform_3, window_bounds = array<i64: 1, 4, 1>}, {transform_indices = @transform_4, window_bounds = array<i64: 1, 1, 32>}]} {
    %c0_i32 = arith.constant 0 : i32
    %0 = arith.cmpi eq, %arg1, %c0_i32 : i32
    %1 = arith.extui %0 : i1 to i32
    %c0_i32_0 = arith.constant 0 : i32
    %2 = arith.cmpi ne, %1, %c0_i32_0 : i32
    scf.if %2 {
      %cst_16 = arith.constant 0.000000e+00 : f32
      %20 = vector.broadcast %cst_16 : f32 to vector<1x32xf32>
      %c0_17 = arith.constant 0 : index
      %c0_18 = arith.constant 0 : index
      %21 = vector.load %arg7[%c0_17, %c0_18] : memref<1x32xf32, #tpu.memory_space<vmem>>, vector<1x32xf32>
      tpu.vector_store %arg7[%c0_17, %c0_18], %20 {strides = array<i32>} : memref<1x32xf32, #tpu.memory_space<vmem>>, vector<1x32xf32>,
      %cst_19 = arith.constant 0.000000e+00 : f32
      %22 = vector.broadcast %cst_19 : f32 to vector<1x32xf32>
      %c0_20 = arith.constant 0 : index
      %c0_21 = arith.constant 0 : index
      %23 = vector.load %arg8[%c0_20, %c0_21] : memref<1x32xf32, #tpu.memory_space<vmem>>, vector<1x32xf32>
      tpu.vector_store %arg8[%c0_20, %c0_21], %22 {strides = array<i32>} : memref<1x32xf32, #tpu.memory_space<vmem>>, vector<1x32xf32>,
    } else {
    }
    %c0 = arith.constant 0 : index
    %c0_1 = arith.constant 0 : index
    %c0_2 = arith.constant 0 : index
    %3 = vector.load %arg2[%c0, %c0_1, %c0_2] : memref<1x16x16xf32, #tpu.memory_space<vmem>>, vector<1x16x16xf32>
    %4 = vector.shape_cast %3 : vector<1x16x16xf32> to vector<16x16xf32>
    %c0_3 = arith.constant 0 : index
    %c0_4 = arith.constant 0 : index
    %5 = vector.load %arg3[%c0_3, %c0_4] : memref<16x32xf32, #tpu.memory_space<vmem>>, vector<16x32xf32>
    %cst = arith.constant dense<0.000000e+00> : vector<16x32xf32>
    %6 = tpu.matmul %4, %5, %cst {dimension_numbers = #tpu.dot_dimension_numbers<[1], [0], [0], [1], [0, 0, 1, 1], [], []>} : vector<16x16xf32>, vector<16x32xf32>, vector<16x32xf32> -> vector<16x32xf32>
    %7 = vector.shape_cast %6 : vector<16x32xf32> to vector<1x16x32xf32>
    %c0_5 = arith.constant 0 : index
    %c0_6 = arith.constant 0 : index
    %8 = vector.load %arg7[%c0_5, %c0_6] : memref<1x32xf32, #tpu.memory_space<vmem>>, vector<1x32xf32>
    %cst_7 = arith.constant dense<0.000000e+00> : vector<1x32xf32>
    %9 = vector.multi_reduction <add>, %7, %cst_7 [1] : vector<1x16x32xf32> to vector<1x32xf32>
    %10 = arith.addf %8, %9 : vector<1x32xf32>
    %c0_8 = arith.constant 0 : index
    %c0_9 = arith.constant 0 : index
    %11 = vector.load %arg7[%c0_8, %c0_9] : memref<1x32xf32, #tpu.memory_space<vmem>>, vector<1x32xf32>
    tpu.vector_store %arg7[%c0_8, %c0_9], %10 {strides = array<i32>} : memref<1x32xf32, #tpu.memory_space<vmem>>, vector<1x32xf32>,
    %c0_10 = arith.constant 0 : index
    %c0_11 = arith.constant 0 : index
    %12 = vector.load %arg8[%c0_10, %c0_11] : memref<1x32xf32, #tpu.memory_space<vmem>>, vector<1x32xf32>
    %13 = arith.mulf %7, %7 : vector<1x16x32xf32>
    %cst_12 = arith.constant dense<0.000000e+00> : vector<1x32xf32>
    %14 = vector.multi_reduction <add>, %13, %cst_12 [1] : vector<1x16x32xf32> to vector<1x32xf32>
    %15 = arith.addf %12, %14 : vector<1x32xf32>
    %c0_13 = arith.constant 0 : index
    %c0_14 = arith.constant 0 : index
    %16 = vector.load %arg8[%c0_13, %c0_14] : memref<1x32xf32, #tpu.memory_space<vmem>>, vector<1x32xf32>
    tpu.vector_store %arg8[%c0_13, %c0_14], %15 {strides = array<i32>} : memref<1x32xf32, #tpu.memory_space<vmem>>, vector<1x32xf32>,
    %c3_i32 = arith.constant 3 : i32
    %17 = arith.cmpi eq, %arg1, %c3_i32 : i32
    %18 = arith.extui %17 : i1 to i32
    %c0_i32_15 = arith.constant 0 : i32
    %19 = arith.cmpi ne, %18, %c0_i32_15 : i32
    scf.if %19 {
      %c0_16 = arith.constant 0 : index
      %c0_17 = arith.constant 0 : index
      %20 = vector.load %arg7[%c0_16, %c0_17] : memref<1x32xf32, #tpu.memory_space<vmem>>, vector<1x32xf32>
      %cst_18 = arith.constant 1.562500e-02 : f32
      %21 = vector.broadcast %cst_18 : f32 to vector<1x32xf32>
      %22 = arith.mulf %20, %21 : vector<1x32xf32>
      %c0_19 = arith.constant 0 : index
      %c0_20 = arith.constant 0 : index
      %23 = vector.load %arg8[%c0_19, %c0_20] : memref<1x32xf32, #tpu.memory_space<vmem>>, vector<1x32xf32>
      %cst_21 = arith.constant 1.562500e-02 : f32
      %24 = vector.broadcast %cst_21 : f32 to vector<1x32xf32>
      %25 = arith.mulf %23, %24 : vector<1x32xf32>
      %26 = arith.mulf %22, %22 : vector<1x32xf32>
      %27 = arith.subf %25, %26 : vector<1x32xf32>
      %cst_22 = arith.constant 0.000000e+00 : f32
      %28 = vector.broadcast %cst_22 : f32 to vector<1x32xf32>
      %29 = arith.maximumf %27, %28 : vector<1x32xf32>
      %c0_23 = arith.constant 0 : index
      %c0_24 = arith.constant 0 : index
      %30 = vector.load %arg4[%c0_23, %c0_24] : memref<4x32xf32, #tpu.memory_space<vmem>>, vector<4x32xf32>
      %31 = vector.shape_cast %22 : vector<1x32xf32> to vector<1x1x32xf32>
      %32 = vector.shape_cast %30 : vector<4x32xf32> to vector<1x4x32xf32>
      %33 = vector.broadcast %31 : vector<1x1x32xf32> to vector<1x4x32xf32>
      %34 = arith.subf %33, %32 : vector<1x4x32xf32>
      %35 = vector.shape_cast %29 : vector<1x32xf32> to vector<1x1x32xf32>
      %36 = arith.mulf %34, %34 : vector<1x4x32xf32>
      %37 = vector.broadcast %35 : vector<1x1x32xf32> to vector<1x4x32xf32>
      %38 = arith.addf %37, %36 : vector<1x4x32xf32>
      %39 = math.sqrt %38 : vector<1x4x32xf32>
      %c0_25 = arith.constant 0 : index
      %c0_26 = arith.constant 0 : index
      %c0_27 = arith.constant 0 : index
      %40 = vector.load %arg5[%c0_25, %c0_26, %c0_27] : memref<1x4x1xf32, #tpu.memory_space<vmem>>, vector<1x4x1xf32>
      %41 = vector.broadcast %40 : vector<1x4x1xf32> to vector<1x4x32xf32>
      %42 = arith.mulf %41, %39 : vector<1x4x32xf32>
      %cst_28 = arith.constant dense<0.000000e+00> : vector<1x32xf32>
      %43 = vector.multi_reduction <add>, %42, %cst_28 [1] : vector<1x4x32xf32> to vector<1x32xf32>
      %44 = vector.shape_cast %43 : vector<1x32xf32> to vector<1x1x32xf32>
      %c0_29 = arith.constant 0 : index
      %c0_30 = arith.constant 0 : index
      %c0_31 = arith.constant 0 : index
      %45 = vector.load %arg6[%c0_29, %c0_30, %c0_31] : memref<1x1x32xf32, #tpu.memory_space<vmem>>, vector<1x1x32xf32>
      tpu.vector_store %arg6[%c0_29, %c0_30, %c0_31], %44 {strides = array<i32>} : memref<1x1x32xf32, #tpu.memory_space<vmem>>, vector<1x1x32xf32>,
    } else {
    }
    return
  }
  func.func @transform_0(%arg0: i32, %arg1: i32) -> (i32, i32, i32) {
    %c0_i32 = arith.constant 0 : i32
    %c0_i32_0 = arith.constant 0 : i32
    return %arg0, %arg1, %c0_i32 : i32, i32, i32
  }
  func.func @transform_1(%arg0: i32, %arg1: i32) -> (i32, i32) {
    %c0_i32 = arith.constant 0 : i32
    %c0_i32_0 = arith.constant 0 : i32
    %c0_i32_1 = arith.constant 0 : i32
    return %c0_i32, %c0_i32_0 : i32, i32
  }
  func.func @transform_2(%arg0: i32, %arg1: i32) -> (i32, i32) {
    %c0_i32 = arith.constant 0 : i32
    %c0_i32_0 = arith.constant 0 : i32
    %c0_i32_1 = arith.constant 0 : i32
    return %c0_i32, %c0_i32_0 : i32, i32
  }
  func.func @transform_3(%arg0: i32, %arg1: i32) -> (i32, i32, i32) {
    %c0_i32 = arith.constant 0 : i32
    %c0_i32_0 = arith.constant 0 : i32
    %c0_i32_1 = arith.constant 0 : i32
    return %arg0, %c0_i32, %c0_i32_0 : i32, i32, i32
  }
  func.func @transform_4(%arg0: i32, %arg1: i32) -> (i32, i32, i32) {
    %c0_i32 = arith.constant 0 : i32
    %c0_i32_0 = arith.constant 0 : i32
    %c0_i32_1 = arith.constant 0 : i32
    return %arg0, %c0_i32, %c0_i32_0 : i32, i32, i32
  }
}

</mosaic_0001>

<bundles_post_ra>
// kernel: tpu_custom_call.1
= control target key start
LH: loop header
LB: loop body
LE: loop exit
PB: predicated region body
PF: predicated region fallthrough
CT: control target
= control target key end

     0   :  { %9 = vsyncpa [#allocation5], 0  ;;  %s894_s0 = inlined_call_operand.vmem [shape: f32[2,64,16], index: 0, kind: input, shape index: {}]   ;;  %s895_s1 = inlined_call_operand.vmem [shape: f32[16,32], index: 1, kind: input, shape index: {}]   ;;  %s896_s2 = inlined_call_operand.vmem [shape: f32[4,32], index: 2, kind: input, shape index: {}]   ;;  %s897_s3 = inlined_call_operand.vmem [shape: f32[2,4,1], index: 3, kind: input, shape index: {}]   ;;  %s898_s4 = inlined_call_operand.hbm [shape: f32[2,1,32], index: 4, kind: output, shape index: {}]  }
   0x1   :  { %11 = vsyncpa [#allocation5 + $0x1], 0  ;;  %s739_s15 = smov 0   ;;  %s741_s16 = smov 0  }
   0x2   :  { %s743_s17 = smov 0   ;;  %s745_s18 = smov 0  }
   0x3   :  { %s747_s19 = smov 0   ;;  %s749_s20 = smov 0  }
   0x4   :  { %s751_s21 = smov 0   ;;  %s753_s22 = smov 0  }
   0x5 LB: > { %s508_s23 = sadd.s32 4294967295, %s709_s22   ;;  %s509_s24 = sadd.s32 4294967294, %s709_s22   ;;  %s709_s22 = sphi %s753_s22, %s17_s22   ;;  %s705_s21 = sphi %s751_s21, %s910_s21   ;;  %s701_s20 = sphi %s749_s20, %s909_s20   ;;  %s697_s19 = sphi %s747_s19, %s908_s19   ;;  %s693_s18 = sphi %s745_s18, %s907_s18   ;;  %s689_s17 = sphi %s743_s17, %s906_s17   ;;  %s685_s16 = sphi %s741_s16, %s905_s16   ;;  %s681_s15 = sphi %s739_s15, %s904_s15  }
   0x6   : > { %s26_s25 = sadd.s32 1, %s701_s20  ;;  %s29_s26 = sadd.s32 1, %s705_s21 }
   0x7   : > { %p27_p0 = scmp.ge.s32.totalorder %s26_s25, 4  ;;  %p142_p1 = scmp.ne.s32.totalorder %s689_s17, %s685_s16 }
   0x8   : > { %p143_p2 = scmp.eq.s32.totalorder %s508_s23, 7  ;;  %p148_p4 = scmp.ne.s32.totalorder %s685_s16, %s681_s15 }
   0x9   : > { %s912_s25 = smov (%p27_p0, %s26_s25), 0  ;;  %s914_s26 = smov (!%p27_p0, %s29_s26), %s705_s21 }
   0xa   : > { %p788_p3 = por %p143_p2, %p142_p1  ;;  %p31_p5 = scmp.ge.s32.totalorder %s914_s26, 2 }
   0xb   : > { %p149_p6 = scmp.eq.s32.totalorder %s509_s24, 7  ;;  %p512_p7 = scmp.ge.s32.totalorder %s709_s22, 1 }
   0xc   : > { %p193_p8 = scmp.lt.s32.totalorder %s709_s22, 9  ;;  %s916_s26 = smov (%p31_p5, %s914_s26), 0 }
   0xd   : > { %901 = sst [smem:[#allocation7_spill]] %s916_s26  ;;  %p798_p9 = por %p149_p6, %p148_p4 }
   0xe   : > { %p194_p10 = pnand %p512_p7, %p193_p8  ;;  %s129_s29 = ssub.s32 %s705_s21, %s916_s26 }
   0xf   : > { %s132_s30 = sadd.s32 1, %s689_s17  ;;  %p130_p11 = scmp.eq.s32.totalorder %s129_s29, 0 }
  0x10   : > { %197 = sbr.rel (%p194_p10) target bundleno = 343 (0x157), region = 36  ;;  %s224_s6 = sand.u32 (!%p194_p10), 1, %s685_s16  }
  0x11   : > { %s806_s5 = scalar_select %p130_p11, %s689_s17, %s132_s30  }
  0x12   : > { %s513_s7 = sshll.u32 (!%p194_p10), %s693_s18, 1  ;;  %p227_p12 = scmp.lt.s32.totalorder (!%p194_p10), %s697_s19, 1 }
  0x13   : > { %p229_p13 = scmp.lt.s32.totalorder (!%p194_p10), %s513_s7, 7  ;;  %s822_s26 = scalar_lea.vmem (!%p194_p10), [#allocation4], %s224_s6 }
  0x14   : > { %p517_p0 = scmp.ne.s32.totalorder (!%p194_p10), %s693_s18, 0 }
  0x17   : > { %s228_s8 = scalar_select %p227_p12, %s697_s19, 1 }
  0x18   : > { %s918_s7 = smov (!%p229_p13, %s513_s7), 7  ;;  %243 = sbr.rel (%p517_p0) target bundleno = 31 (0x1f), region = 40 }
  0x19   : > { %s514_s9 = sshll.u32 %s228_s8, 3  ;;  %s516_s10 = sshll.u32 %s228_s8, 2  ;;  %vm244_vm0 = vcmask (!%p517_p0), 253952   ;;  %v711_v0 = vmov (!%p517_p0), 0.0  }
  0x1a   : > { %s232_s11 = sadd.s32 %s514_s9, %s918_s7  ;;  %s815_s14 = scalar_lea.vmem %s897_s3, %s516_s10  ;;  %245 = vst.msk [vmem:[#allocation2] sm:$0x1] (!%p517_p0), %vm244_vm0, %v711_v0  ;;  %246 = vst.msk [vmem:[#allocation3] sm:$0x1] (!%p517_p0), %vm244_vm0, %v711_v0 }
  0x1b   : > { %s515_s23 = sshll.u32 %s232_s11, 3 }
  0x1c   : > { %s234_s30 = scalar_lea.vmem %s894_s0, %s515_s23 }
  0x1f PF: > { %v249_v1 = vld [vmem:[%s895_s1] sm:$0xff]  ;;  %v250_v2 = vld [vmem:[%s895_s1 + $0x8] sm:$0xff]  ;;  %vm251_vm1 = vcmask 130048   ;;  %vm334_vm2 = vcmask 261120   ;;  %vm345_vm3 = vcmask 253952   ;;  %p520_p1 = scmp.ne.s32.totalorder %s693_s18, 3 }
  0x20   : > { %v247_v3 = vld [vmem:[%s234_s30] sm:$0xff]  ;;  %v535_v4 = vpack.c.bf16 %v250_v2, %v249_v1  ;;  %v248_v5 = vld [vmem:[%s234_s30 + $0x8] sm:$0xff]  ;;  %v712_v33 = vmov (!%p520_p1), 0   ;;  %v374_v34 = vlaneseq (!%p520_p1)  ;;  %vm402_vm6 = vcmask (!%p520_p1), 257024  }
  0x21   : > { %532 = vmatprep.mubr.msk.f32.mxu0 %vm251_vm1, %v247_v3  ;;  %v333_v25 = vld [vmem:[#allocation2] sm:$0x1]  ;;  %v347_v28 = vld [vmem:[#allocation3] sm:$0x1]  ;;  %612 = vset.pattern.permute.xlu0 (!%p520_p1), %v712_v33 }
  0x22   : > { %536 = vmatprep.subr.bf16.mxu0 %v535_v4  ;;  %v395_v32 = vld [vmem:[%s815_s14] sm:$0xf] (!%p520_p1)  ;;  %v375_v37 = vshrl.u32 (!%p520_p1), %v374_v34, 7 }
  0x23   : > { %538 = vmatpush3.bf16.msra.mxu0 %v535_v4  ;;  %398 = vperm.xlu0 (!%p520_p1), %612, %v395_v32   ;;  %v372_v44 = vld [vmem:[%s896_s2] sm:$0xf] (!%p520_p1) }
  0x24   : > { %v376_v41 = vsub.s32 (!%p520_p1), 0, %v375_v37 }
  0x26   : > { %533 = vmatmul.mubr.msk.f32.vlgmr.msra.gmra.mrb[0].mxu0 %vm251_vm1, %v248_v5 }
  0xa2   : > { %v399_v55 = vpop.permute.xlu0 (!%p520_p1), %398 }
  0xf9   : > { %v534_v6 = vpop.f32.mrb[0].mxu0 }
  0xfa   : > { %v336_v7 = vsel %vm334_vm2, %v534_v6, 0.0  ;;  %v349_v8 = vmul.f32 %v534_v6, %v534_v6  ;;  %v324_v9 = vpop.f32.mrb[1].mxu0 }
  0xfb   : > { %v335_v10 = vsel %vm334_vm2, %v324_v9, 0.0  ;;  %v348_v11 = vmul.f32 %v324_v9, %v324_v9 }
  0xfc   : > { %v351_v12 = vsel %vm334_vm2, %v349_v8, 0.0  ;;  %v337_v13 = vadd.f32 %v336_v7, %v335_v10 }
  0xfd   : > { %v350_v14 = vsel %vm334_vm2, %v348_v11, 0.0 }
  0xfe   : > { %v338_v15 = vrot.slane %v337_v13, 4  ;;  %v352_v16 = vadd.f32 %v351_v12, %v350_v14 }
 0x100   : > { %v339_v17 = vadd.f32 %v338_v15, %v337_v13  ;;  %v353_v18 = vrot.slane %v352_v16, 4 }
 0x102   : > { %v340_v19 = vrot.slane %v339_v17, 2  ;;  %v354_v20 = vadd.f32 %v353_v18, %v352_v16 }
 0x104   : > { %v341_v21 = vadd.f32 %v340_v19, %v339_v17  ;;  %v355_v22 = vrot.slane %v354_v20, 2 }
 0x106   : > { %v342_v23 = vrot.slane %v341_v21, 1  ;;  %v356_v24 = vadd.f32 %v355_v22, %v354_v20 }
 0x108   : > { %v343_v26 = vadd.f32 %v342_v23, %v341_v21  ;;  %v357_v27 = vrot.slane %v356_v24, 1  ;;  %364 = sbr.rel (%p520_p1) target bundleno = 319 (0x13f), region = 44 }
 0x10a   : > { %v344_v29 = vadd.f32 %v343_v26, %v333_v25  ;;  %v358_v30 = vadd.f32 %v357_v27, %v356_v24 }
 0x10c   : > { %346 = vst.msk [vmem:[#allocation2] sm:$0x1] %vm345_vm3, %v344_v29  ;;  %v359_v31 = vadd.f32 %v358_v30, %v347_v28 }
 0x10e   : > { %360 = vst.msk [vmem:[#allocation3] sm:$0x1] %vm345_vm3, %v359_v31 }
 0x113   : > { %v365_v35 = vld [vmem:[#allocation2] sm:$0x1] }
 0x114   : > { %v366_v36 = vmul.f32 0.015625, %v365_v35 }
 0x115   : > { %v367_v38 = vld [vmem:[#allocation3] sm:$0x1] }
 0x116   : > { %v368_v39 = vmul.f32 0.015625, %v367_v38  ;;  %v369_v40 = vmul.f32 %v366_v36, %v366_v36  ;;  %v377_v43 = vrot.slane %v366_v36, %v376_v41 }
 0x118   : > { %v370_v42 = vsub.f32 %v368_v39, %v369_v40  ;;  %v379_v46 = vsub.f32 %v377_v43, %v372_v44 }
 0x11a   : > { %v371_v45 = vmax.f32 %v370_v42, 0.0  ;;  %v380_v47 = vmul.f32 %v379_v46, %v379_v46 }
 0x11c   : > { %v385_v48 = vrot.slane %v371_v45, %v376_v41 }
 0x11e   : > { %v387_v49 = vadd.f32 %v385_v48, %v380_v47 }
 0x120   : > { %613 = vrsqrt.f32 %v387_v49  ;;  %vm390_vm4 = vcmp.eq.f32.partialorder %v387_v49, inf  ;;  %v393_v52 = vand.u32 2147483648, %v387_v49  ;;  %vm392_vm5 = vcmp.eq.f32.partialorder %v387_v49, 0.0 }
 0x12a   : > { %v614_v50 = vpop.eup %613 }
 0x12b   : > { %v389_v51 = vmul.f32 %v614_v50, %v387_v49 }
 0x12d   : > { %v391_v53 = vsel %vm390_vm4, %v387_v49, %v389_v51 }
 0x12e   : > { %v394_v54 = vsel %vm392_vm5, %v393_v52, %v391_v53 }
 0x12f   : > { %v401_v56 = vmul.f32 %v399_v55, %v394_v54 }
 0x131   : > { %v403_v57 = vsel %vm402_vm6, %v401_v56, 0.0 }
 0x132   : > { %v404_v58 = vrot.slane %v403_v57, 4 }
 0x134   : > { %v405_v59 = vadd.f32 %v404_v58, %v403_v57 }
 0x136   : > { %v406_v60 = vrot.slane %v405_v59, 2 }
 0x138   : > { %v407_v61 = vadd.f32 %v406_v60, %v405_v59 }
 0x13a   : > { %v408_v62 = vrot.slane %v407_v61, 1 }
 0x13c   : > { %v409_v63 = vadd.f32 %v408_v62, %v407_v61 }
 0x13e   : > { %410 = vst.msk [vmem:[%s822_s26] sm:$0x1] %vm345_vm3, %v409_v63 }
 0x13f PF: > { %s521_s18 = sshll.u32 %s697_s19, 4  ;;  %s424_s24 = sshll.u32 %s822_s26, 4  ;;  %s425_s24 = int_to_ptr.vmem [resolvable:$true] %s424_s24 }
 0x140   : > { %s844_s23 = scalar_lea.hbm %s898_s4, %s521_s18  ;;  %s412_s29 = scalar_lea.sflag [#allocation5], %s224_s6 }
 0x141   : > { %s615_s30 = scalar_lea.vmem %s425_s24, 16  ;;  %s713_s7 = smov [#allocation4]  }
 0x142   : > { %p616_p2 = scmp.ne.s32.totalorder %s425_s24, %s615_s30  ;;  %s619_s8 = sshll.u32 %s713_s7, 4  ;;  %s620_s8 = int_to_ptr.vmem [resolvable:$false] %s619_s8 }
 0x143   : > { %s621_s9 = scalar_lea.vmem %s620_s8, 32  ;;  %p622_p6 = scmp.lt.s32.totalorder %s425_s24, %s620_s8 }
 0x144   : > { %p617_p4 = pnand %p616_p2, %p788_p3  ;;  %p623_p7 = scmp.lt.s32.totalorder %s621_s9, %s615_s30 }
 0x146   : > { %p618_p5 = pneg %p617_p4  ;;  %p624_p8 = por %p623_p7, %p622_p6 }
 0x148   : > { %p625_p10 = pnand %p624_p8, %p618_p5 }
 0x14a   : > { %628 = shalt.err (!%p625_p10)
}
 0x14b   : > { %s629_s19 = scalar_lea.hbm %s844_s23, 16  ;;  %s633_s10 = scalar_lea.hbm %s898_s4, 32 }
 0x14c   : > { %p630_p11 = scmp.ne.s32.totalorder %s844_s23, %s629_s19  ;;  %p634_p0 = scmp.lt.u32.totalorder %s844_s23, %s898_s4 }
 0x14d   : > { %p635_p1 = scmp.lt.u32.totalorder %s633_s10, %s629_s19  ;;  %p637_p4 = scmp.lt.u32.totalorder %s629_s19, %s844_s23 }
 0x14e   : > { %p631_p12 = pnand %p630_p11, %p788_p3 }
 0x14f   : > { %p636_p2 = por %p635_p1, %p634_p0 }
 0x150   : > { %p632_p13 = pneg %p631_p12 }
 0x151   : > { %p638_p5 = por %p637_p4, %p636_p2 }
 0x153   : > { %p639_p6 = pnand %p638_p5, %p632_p13 }
 0x155   : > { %642 = shalt.err (!%p639_p6)
}
 0x156   : > { %539 = dma.vmem_to_hbm [thread:$0]  (%p788_p3), %s425_s24, 16, %s844_s23, %s412_s29  }
 0x157 PF: > { %p545_p7 = scmp.ge.s32.totalorder %s709_s22, 2  ;;  %s436_s18 = sand.u32 1, %s681_s15  }
 0x158   : > { %s437_s13 = scalar_lea.sflag [#allocation5], %s436_s18 }
 0x159   : > { %p542_p8 = pnand %p545_p7, %p798_p9 }
 0x15b   : > { %676 = dma.done.wait (!%p542_p8), %s437_s13, 16  }
 0x15c   : > { %678 = vsyncadd (!%p542_p8), %s437_s13, 4294967280  ;;  %s17_s22 = sadd.s32 1, %s709_s22   ;;  %s903_s27 = sld [smem:[#allocation7_spill]] }
 0x15d   : > { %p14_p10 = scmp.ge.s32.totalorder %s17_s22, 10   ;;  %s904_s15 = smov %s685_s16 }
 0x15e   : > { %s905_s16 = smov %s689_s17  ;;  %s906_s17 = smov %s806_s5 }
 0x15f   : > { %s907_s18 = smov %s701_s20  ;;  %s908_s19 = smov %s705_s21 }
 0x160   : > { %s909_s20 = smov %s912_s25  ;;  %16 = sbr.rel (!%p14_p10) target bundleno = 5 (0x5), region = 82 }
 0x162   : > { %s910_s21 = smov %s903_s27 }
 0x167   :  { %441 = vsyncpa [#allocation5], 1 }
 0x168   :  { %443 = vsyncpa [#allocation5 + $0x1], 1 }

</bundles_post_ra>
